<compile_context>
chip_gen: v5e
topology: v5e:2x2
jax: 0.10.0
libtpu: 0.0.40
codegen_flags: <defaults>
</compile_context>

<pallas_src>
import functools

import jax
import jax.numpy as jnp
from jax.experimental import pallas as pl
from jax.experimental.pallas import tpu as pltpu


# ----------------------------------------------------------------------------
# Fused Pallas kernel: all RNN layers + final Linear in one call, wavefront
# ----------------------------------------------------------------------------
def _fused_rnn_fc_kernel(*refs, seq_len, batch_p, hidden, num_layers):
    """refs layout (all full-array VMEM blocks, no grid):
         refs[0]                     : x2d  (T*Bp, I) bf16, time-major, batch-padded
         refs[1], refs[2], refs[3]   : layer 0: W_ih.T (I,H) bf16, W_hh.T (H,H) bf16,
                                                bias (1,H) f32 = b_ih + b_hh
         refs[4+2(l-1)], refs[5+2(l-1)] for l in [1,L):
                                       Wcat_l = [W_ih.T ; W_hh.T] (2H,H) bf16,
                                       bias_l (1,H) f32
         refs[4+2(L-1)], refs[5+2(L-1)] : fc_w.T (H,O) f32, fc_b (1,O) f32
         refs[6+2(L-1)]                 : out_ref (Bp, O) f32
    """
    T, Bp, H, L = seq_len, batch_p, hidden, num_layers
    x_ref = refs[0]
    wih0_ref, whh0_ref, b0_ref = refs[1], refs[2], refs[3]
    fc_base = 4 + 2 * (L - 1)
    fcw_ref, fcb_ref = refs[fc_base], refs[fc_base + 1]
    out_ref = refs[fc_base + 2]

    # One-time, off the serial critical path: hoisted layer-0 input projection
    # for ALL time steps (single MXU matmul, bf16 operands, f32 accumulation).
    # Rows [t*Bp, (t+1)*Bp) hold time step t and form an aligned sublane group
    # thanks to the batch padding.
    gates0 = (jnp.dot(x_ref[...], wih0_ref[...],
                      preferred_element_type=jnp.float32)
              + b0_ref[...])                                     # (T*Bp, H) f32

    whh0 = whh0_ref[...]                                         # (H, H)  bf16
    wcat = [refs[4 + 2 * (l - 1)][...] for l in range(1, L)]     # (2H, H) bf16
    bias = [refs[5 + 2 * (l - 1)][...] for l in range(1, L)]     # (1, H)  f32

    # Skewed wavefront over (layer, time): at virtual step s, layer l computes
    # its time step t = s - l, reading the *pre-update* hidden states (h[l-1]
    # holds layer l-1's output at time t, h[l] holds layer l's output at t-1).
    # The L matmuls inside one virtual step are independent -> overlappable.
    h = [jnp.zeros((Bp, H), jnp.float32) for _ in range(L)]
    # TODO(synk): switch to lax.fori_loop(unroll=2-4) when T grows (>~32) to
    #   avoid vreg spills / compile-time blowup from full unrolling.
    for s in range(T + L - 1):
        h_new = list(h)
        for l in range(L):
            t = s - l
            if 0 <= t < T:
                if l == 0:
                    # Hoisted input projection + bias already in gates0; only
                    # the recurrent matmul remains on the per-step path.
                    pre = gates0[t * Bp:(t + 1) * Bp, :] + jnp.dot(
                        h[0].astype(jnp.bfloat16), whh0,
                        preferred_element_type=jnp.float32)
                else:
                    # Fused [input ; recurrent] projection: ONE matmul against
                    # the pre-concatenated [W_ih.T ; W_hh.T] weight — no
                    # staging of the inter-layer sequence, no big concatenate.
                    xcat = jnp.concatenate([h[l - 1], h[l]], axis=1)  # (Bp, 2H) f32
                    pre = (jnp.dot(xcat.astype(jnp.bfloat16), wcat[l - 1],
                                   preferred_element_type=jnp.float32)
                           + bias[l - 1])
                h_new[l] = jnp.tanh(pre)
        h = h_new

    # Final Linear on the last layer's last-time-step hidden state (kept f32;
    # negligible cost).  NOTE: O=4 < 128 -> lane-masked store; fine at this
    # size, keep O a multiple of 128 (or a padded slab) if it ever grows.
    out_ref[...] = (jnp.dot(h[L - 1], fcw_ref[...],
                            preferred_element_type=jnp.float32)
                    + fcb_ref[...]).astype(out_ref.dtype)


# ----------------------------------------------------------------------------
# Wrappers
# ----------------------------------------------------------------------------
def prepare_params(params):
    """One-time weight prep (outside jit): transpose, fuse biases, cast MXU
    operands to bf16, pre-concatenate [W_ih.T ; W_hh.T] for layers l>0."""
    rnn = params["rnn"]
    w_ih0, w_hh0, b_ih0, b_hh0 = rnn[0]
    layer0 = (
        w_ih0.T.astype(jnp.bfloat16),                       # (I, H)
        w_hh0.T.astype(jnp.bfloat16),                       # (H, H)
        (b_ih0 + b_hh0).reshape(1, -1).astype(jnp.float32),  # (1, H)
    )
    deep = []
    for (w_ih, w_hh, b_ih, b_hh) in rnn[1:]:
        wcat = jnp.concatenate([w_ih.T, w_hh.T], axis=0).astype(jnp.bfloat16)  # (2H, H)
        deep.append((wcat, (b_ih + b_hh).reshape(1, -1).astype(jnp.float32)))
    return {
        "layer0": layer0,
        "deep": tuple(deep),
        "fc_w_t": params["fc_w"].T.astype(jnp.float32),      # (H, O)
        "fc_b": params["fc_b"].reshape(1, -1).astype(jnp.float32),  # (1, O)
    }


@jax.jit
def rnn_model_forward(x, prep):
    """x: (B, T, input_size) batch-first, like the PyTorch module."""
    B, T, I = x.shape
    wih0T, whh0T, b0 = prep["layer0"]
    H = whh0T.shape[0]
    L = 1 + len(prep["deep"])
    O = prep["fc_w_t"].shape[1]

    # Pad batch to a full f32 sublane group (8 rows); zero rows are harmless
    # (all kernel ops are row-wise, padded rows never mix with real rows).
    Bp = ((B + 7) // 8) * 8
    xp = jnp.zeros((Bp, T, I), x.dtype).at[:B].set(x)
    # Time-major, flattened, bf16 MXU operand: rows [t*Bp, (t+1)*Bp) = step t.
    x2d = jnp.transpose(xp, (1, 0, 2)).reshape(T * Bp, I).astype(jnp.bfloat16)

    flat_args = [x2d, wih0T, whh0T, b0]
    for (wcat, bias) in prep["deep"]:
        flat_args += [wcat, bias]
    flat_args += [prep["fc_w_t"], prep["fc_b"]]

    kernel = functools.partial(
        _fused_rnn_fc_kernel, seq_len=T, batch_p=Bp, hidden=H, num_layers=L)

    vmem_spec = pl.BlockSpec(memory_space=pltpu.MemorySpace.VMEM)
    out_p = pl.pallas_call(
        kernel,
        out_shape=jax.ShapeDtypeStruct((Bp, O), jnp.float32),
        in_specs=[vmem_spec] * len(flat_args),
        out_specs=vmem_spec,
    )(*flat_args)

    return out_p[:B]


# ----------------------------------------------------------------------------
# Deterministic parameter init (matches PyTorch nn.RNN / nn.Linear shapes)
# ----------------------------------------------------------------------------
def init_params(key, input_size, hidden_size, num_layers, output_size):
    params = {"rnn": []}
    bound = 1.0 / jnp.sqrt(hidden_size)
    for layer in range(num_layers):
        in_sz = input_size if layer == 0 else hidden_size
        key, k1, k2, k3, k4 = jax.random.split(key, 5)
        w_ih = jax.random.uniform(k1, (hidden_size, in_sz), jnp.float32, -bound, bound)
        w_hh = jax.random.uniform(k2, (hidden_size, hidden_size), jnp.float32, -bound, bound)
        b_ih = jax.random.uniform(k3, (hidden_size,), jnp.float32, -bound, bound)
        b_hh = jax.random.uniform(k4, (hidden_size,), jnp.float32, -bound, bound)
        params["rnn"].append((w_ih, w_hh, b_ih, b_hh))
    key, k5, k6 = jax.random.split(key, 3)
    fc_bound = 1.0 / jnp.sqrt(hidden_size)
    params["fc_w"] = jax.random.uniform(k5, (output_size, hidden_size), jnp.float32, -fc_bound, fc_bound)
    params["fc_b"] = jax.random.uniform(k6, (output_size,), jnp.float32, -fc_bound, fc_bound)
    return params


# ----------------------------------------------------------------------------
# Pure-JAX f32 reference (correctness sanity check)
# ----------------------------------------------------------------------------
def reference_forward(x, params, num_layers):
    h_seq = jnp.transpose(x, (1, 0, 2))  # (T, B, I)
    for layer in range(num_layers):
        w_ih, w_hh, b_ih, b_hh = params["rnn"][layer]
        B = h_seq.shape[1]
        H = w_ih.shape[0]

        def step(h_prev, x_t):
            h_new = jnp.tanh(x_t @ w_ih.T + b_ih + h_prev @ w_hh.T + b_hh)
            return h_new, h_new

        _, h_seq = jax.lax.scan(step, jnp.zeros((B, H), jnp.float32), h_seq)
    last = h_seq[-1]
    return last @ params["fc_w"].T + params["fc_b"]


if __name__ == "__main__":
    # Small shapes: batch=2, seq=8, input=16, hidden=32, layers=2, output=4
    B, T, INPUT, HIDDEN, LAYERS, OUTPUT = 2, 8, 16, 32, 2, 4

    key = jax.random.PRNGKey(0)
    key, kx = jax.random.split(key)
    x = jax.random.normal(kx, (B, T, INPUT), jnp.float32)
    params = init_params(key, INPUT, HIDDEN, LAYERS, OUTPUT)
    prep = prepare_params(params)

    out = rnn_model_forward(x, prep)
    out = jax.block_until_ready(out)

    ref = reference_forward(x, params, LAYERS)
    assert out.shape == (B, OUTPUT), out.shape
    # bf16 MXU operands (f32 accumulation) lose ~3 decimal digits vs the pure
    # f32 reference -> relaxed tolerance per perf-review guidance.
    assert jnp.allclose(out, ref, atol=2e-2, rtol=2e-2), (out, ref)

    print("KERNEL_OK")
</pallas_src>

<mosaic_0001>
module attributes {stable_mosaic.version = 11 : i64} {
  func.func @_fused_rnn_fc_kernel(%arg0: memref<64x16xbf16, #tpu.memory_space<vmem>>, %arg1: memref<16x32xbf16, #tpu.memory_space<vmem>>, %arg2: memref<32x32xbf16, #tpu.memory_space<vmem>>, %arg3: memref<1x32xf32, #tpu.memory_space<vmem>>, %arg4: memref<64x32xbf16, #tpu.memory_space<vmem>>, %arg5: memref<1x32xf32, #tpu.memory_space<vmem>>, %arg6: memref<32x4xf32, #tpu.memory_space<vmem>>, %arg7: memref<1x4xf32, #tpu.memory_space<vmem>>, %arg8: memref<8x4xf32, #tpu.memory_space<vmem>>) attributes {dimension_semantics = [], scalar_prefetch = 0 : i64, scratch_operands = 0 : i64, tpu.core_type = #tpu.core_type<tc>} {
    %c0 = arith.constant 0 : index
    %c0_0 = arith.constant 0 : index
    %0 = vector.load %arg0[%c0, %c0_0] : memref<64x16xbf16, #tpu.memory_space<vmem>>, vector<64x16xbf16>
    %c0_1 = arith.constant 0 : index
    %c0_2 = arith.constant 0 : index
    %1 = vector.load %arg1[%c0_1, %c0_2] : memref<16x32xbf16, #tpu.memory_space<vmem>>, vector<16x32xbf16>
    %cst = arith.constant dense<0.000000e+00> : vector<64x32xf32>
    %2 = tpu.matmul %0, %1, %cst {dimension_numbers = #tpu.dot_dimension_numbers<[1], [0], [0], [1], [0, 0, 1, 1], [], []>} : vector<64x16xbf16>, vector<16x32xbf16>, vector<64x32xf32> -> vector<64x32xf32>
    %c0_3 = arith.constant 0 : index
    %c0_4 = arith.constant 0 : index
    %3 = vector.load %arg3[%c0_3, %c0_4] : memref<1x32xf32, #tpu.memory_space<vmem>>, vector<1x32xf32>
    %4 = vector.broadcast %3 : vector<1x32xf32> to vector<64x32xf32>
    %5 = arith.addf %2, %4 : vector<64x32xf32>
    %c0_5 = arith.constant 0 : index
    %c0_6 = arith.constant 0 : index
    %6 = vector.load %arg2[%c0_5, %c0_6] : memref<32x32xbf16, #tpu.memory_space<vmem>>, vector<32x32xbf16>
    %c0_7 = arith.constant 0 : index
    %c0_8 = arith.constant 0 : index
    %7 = vector.load %arg4[%c0_7, %c0_8] : memref<64x32xbf16, #tpu.memory_space<vmem>>, vector<64x32xbf16>
    %c0_9 = arith.constant 0 : index
    %c0_10 = arith.constant 0 : index
    %8 = vector.load %arg5[%c0_9, %c0_10] : memref<1x32xf32, #tpu.memory_space<vmem>>, vector<1x32xf32>
    %cst_11 = arith.constant 0.000000e+00 : f32
    %9 = vector.broadcast %cst_11 : f32 to vector<8x32xf32>
    %cst_12 = arith.constant 0.000000e+00 : f32
    %10 = vector.broadcast %cst_12 : f32 to vector<8x32xf32>
    %11 = vector.extract_strided_slice %5 {offsets = [0, 0], sizes = [8, 32], strides = [1, 1]} : vector<64x32xf32> to vector<8x32xf32>
    %12 = arith.truncf %9 : vector<8x32xf32> to vector<8x32xbf16>
    %cst_13 = arith.constant dense<0.000000e+00> : vector<8x32xf32>
    %13 = tpu.matmul %12, %6, %cst_13 {dimension_numbers = #tpu.dot_dimension_numbers<[1], [0], [0], [1], [0, 0, 1, 1], [], []>} : vector<8x32xbf16>, vector<32x32xbf16>, vector<8x32xf32> -> vector<8x32xf32>
    %14 = arith.addf %11, %13 : vector<8x32xf32>
    %15 = math.tanh %14 : vector<8x32xf32>
    %16 = vector.extract_strided_slice %5 {offsets = [8, 0], sizes = [8, 32], strides = [1, 1]} : vector<64x32xf32> to vector<8x32xf32>
    %17 = arith.truncf %15 : vector<8x32xf32> to vector<8x32xbf16>
    %cst_14 = arith.constant dense<0.000000e+00> : vector<8x32xf32>
    %18 = tpu.matmul %17, %6, %cst_14 {dimension_numbers = #tpu.dot_dimension_numbers<[1], [0], [0], [1], [0, 0, 1, 1], [], []>} : vector<8x32xbf16>, vector<32x32xbf16>, vector<8x32xf32> -> vector<8x32xf32>
    %19 = arith.addf %16, %18 : vector<8x32xf32>
    %20 = math.tanh %19 : vector<8x32xf32>
    %21 = tpu.concatenate %15, %10 in 1 : vector<8x32xf32>, vector<8x32xf32> -> vector<8x64xf32>
    %22 = arith.truncf %21 : vector<8x64xf32> to vector<8x64xbf16>
    %cst_15 = arith.constant dense<0.000000e+00> : vector<8x32xf32>
    %23 = tpu.matmul %22, %7, %cst_15 {dimension_numbers = #tpu.dot_dimension_numbers<[1], [0], [0], [1], [0, 0, 1, 1], [], []>} : vector<8x64xbf16>, vector<64x32xbf16>, vector<8x32xf32> -> vector<8x32xf32>
    %24 = vector.broadcast %8 : vector<1x32xf32> to vector<8x32xf32>
    %25 = arith.addf %23, %24 : vector<8x32xf32>
    %26 = math.tanh %25 : vector<8x32xf32>
    %27 = vector.extract_strided_slice %5 {offsets = [16, 0], sizes = [8, 32], strides = [1, 1]} : vector<64x32xf32> to vector<8x32xf32>
    %28 = arith.truncf %20 : vector<8x32xf32> to vector<8x32xbf16>
    %cst_16 = arith.constant dense<0.000000e+00> : vector<8x32xf32>
    %29 = tpu.matmul %28, %6, %cst_16 {dimension_numbers = #tpu.dot_dimension_numbers<[1], [0], [0], [1], [0, 0, 1, 1], [], []>} : vector<8x32xbf16>, vector<32x32xbf16>, vector<8x32xf32> -> vector<8x32xf32>
    %30 = arith.addf %27, %29 : vector<8x32xf32>
    %31 = math.tanh %30 : vector<8x32xf32>
    %32 = tpu.concatenate %20, %26 in 1 : vector<8x32xf32>, vector<8x32xf32> -> vector<8x64xf32>
    %33 = arith.truncf %32 : vector<8x64xf32> to vector<8x64xbf16>
    %cst_17 = arith.constant dense<0.000000e+00> : vector<8x32xf32>
    %34 = tpu.matmul %33, %7, %cst_17 {dimension_numbers = #tpu.dot_dimension_numbers<[1], [0], [0], [1], [0, 0, 1, 1], [], []>} : vector<8x64xbf16>, vector<64x32xbf16>, vector<8x32xf32> -> vector<8x32xf32>
    %35 = vector.broadcast %8 : vector<1x32xf32> to vector<8x32xf32>
    %36 = arith.addf %34, %35 : vector<8x32xf32>
    %37 = math.tanh %36 : vector<8x32xf32>
    %38 = vector.extract_strided_slice %5 {offsets = [24, 0], sizes = [8, 32], strides = [1, 1]} : vector<64x32xf32> to vector<8x32xf32>
    %39 = arith.truncf %31 : vector<8x32xf32> to vector<8x32xbf16>
    %cst_18 = arith.constant dense<0.000000e+00> : vector<8x32xf32>
    %40 = tpu.matmul %39, %6, %cst_18 {dimension_numbers = #tpu.dot_dimension_numbers<[1], [0], [0], [1], [0, 0, 1, 1], [], []>} : vector<8x32xbf16>, vector<32x32xbf16>, vector<8x32xf32> -> vector<8x32xf32>
    %41 = arith.addf %38, %40 : vector<8x32xf32>
    %42 = math.tanh %41 : vector<8x32xf32>
    %43 = tpu.concatenate %31, %37 in 1 : vector<8x32xf32>, vector<8x32xf32> -> vector<8x64xf32>
    %44 = arith.truncf %43 : vector<8x64xf32> to vector<8x64xbf16>
    %cst_19 = arith.constant dense<0.000000e+00> : vector<8x32xf32>
    %45 = tpu.matmul %44, %7, %cst_19 {dimension_numbers = #tpu.dot_dimension_numbers<[1], [0], [0], [1], [0, 0, 1, 1], [], []>} : vector<8x64xbf16>, vector<64x32xbf16>, vector<8x32xf32> -> vector<8x32xf32>
    %46 = vector.broadcast %8 : vector<1x32xf32> to vector<8x32xf32>
    %47 = arith.addf %45, %46 : vector<8x32xf32>
    %48 = math.tanh %47 : vector<8x32xf32>
    %49 = vector.extract_strided_slice %5 {offsets = [32, 0], sizes = [8, 32], strides = [1, 1]} : vector<64x32xf32> to vector<8x32xf32>
    %50 = arith.truncf %42 : vector<8x32xf32> to vector<8x32xbf16>
    %cst_20 = arith.constant dense<0.000000e+00> : vector<8x32xf32>
    %51 = tpu.matmul %50, %6, %cst_20 {dimension_numbers = #tpu.dot_dimension_numbers<[1], [0], [0], [1], [0, 0, 1, 1], [], []>} : vector<8x32xbf16>, vector<32x32xbf16>, vector<8x32xf32> -> vector<8x32xf32>
    %52 = arith.addf %49, %51 : vector<8x32xf32>
    %53 = math.tanh %52 : vector<8x32xf32>
    %54 = tpu.concatenate %42, %48 in 1 : vector<8x32xf32>, vector<8x32xf32> -> vector<8x64xf32>
    %55 = arith.truncf %54 : vector<8x64xf32> to vector<8x64xbf16>
    %cst_21 = arith.constant dense<0.000000e+00> : vector<8x32xf32>
    %56 = tpu.matmul %55, %7, %cst_21 {dimension_numbers = #tpu.dot_dimension_numbers<[1], [0], [0], [1], [0, 0, 1, 1], [], []>} : vector<8x64xbf16>, vector<64x32xbf16>, vector<8x32xf32> -> vector<8x32xf32>
    %57 = vector.broadcast %8 : vector<1x32xf32> to vector<8x32xf32>
    %58 = arith.addf %56, %57 : vector<8x32xf32>
    %59 = math.tanh %58 : vector<8x32xf32>
    %60 = vector.extract_strided_slice %5 {offsets = [40, 0], sizes = [8, 32], strides = [1, 1]} : vector<64x32xf32> to vector<8x32xf32>
    %61 = arith.truncf %53 : vector<8x32xf32> to vector<8x32xbf16>
    %cst_22 = arith.constant dense<0.000000e+00> : vector<8x32xf32>
    %62 = tpu.matmul %61, %6, %cst_22 {dimension_numbers = #tpu.dot_dimension_numbers<[1], [0], [0], [1], [0, 0, 1, 1], [], []>} : vector<8x32xbf16>, vector<32x32xbf16>, vector<8x32xf32> -> vector<8x32xf32>
    %63 = arith.addf %60, %62 : vector<8x32xf32>
    %64 = math.tanh %63 : vector<8x32xf32>
    %65 = tpu.concatenate %53, %59 in 1 : vector<8x32xf32>, vector<8x32xf32> -> vector<8x64xf32>
    %66 = arith.truncf %65 : vector<8x64xf32> to vector<8x64xbf16>
    %cst_23 = arith.constant dense<0.000000e+00> : vector<8x32xf32>
    %67 = tpu.matmul %66, %7, %cst_23 {dimension_numbers = #tpu.dot_dimension_numbers<[1], [0], [0], [1], [0, 0, 1, 1], [], []>} : vector<8x64xbf16>, vector<64x32xbf16>, vector<8x32xf32> -> vector<8x32xf32>
    %68 = vector.broadcast %8 : vector<1x32xf32> to vector<8x32xf32>
    %69 = arith.addf %67, %68 : vector<8x32xf32>
    %70 = math.tanh %69 : vector<8x32xf32>
    %71 = vector.extract_strided_slice %5 {offsets = [48, 0], sizes = [8, 32], strides = [1, 1]} : vector<64x32xf32> to vector<8x32xf32>
    %72 = arith.truncf %64 : vector<8x32xf32> to vector<8x32xbf16>
    %cst_24 = arith.constant dense<0.000000e+00> : vector<8x32xf32>
    %73 = tpu.matmul %72, %6, %cst_24 {dimension_numbers = #tpu.dot_dimension_numbers<[1], [0], [0], [1], [0, 0, 1, 1], [], []>} : vector<8x32xbf16>, vector<32x32xbf16>, vector<8x32xf32> -> vector<8x32xf32>
    %74 = arith.addf %71, %73 : vector<8x32xf32>
    %75 = math.tanh %74 : vector<8x32xf32>
    %76 = tpu.concatenate %64, %70 in 1 : vector<8x32xf32>, vector<8x32xf32> -> vector<8x64xf32>
    %77 = arith.truncf %76 : vector<8x64xf32> to vector<8x64xbf16>
    %cst_25 = arith.constant dense<0.000000e+00> : vector<8x32xf32>
    %78 = tpu.matmul %77, %7, %cst_25 {dimension_numbers = #tpu.dot_dimension_numbers<[1], [0], [0], [1], [0, 0, 1, 1], [], []>} : vector<8x64xbf16>, vector<64x32xbf16>, vector<8x32xf32> -> vector<8x32xf32>
    %79 = vector.broadcast %8 : vector<1x32xf32> to vector<8x32xf32>
    %80 = arith.addf %78, %79 : vector<8x32xf32>
    %81 = math.tanh %80 : vector<8x32xf32>
    %82 = vector.extract_strided_slice %5 {offsets = [56, 0], sizes = [8, 32], strides = [1, 1]} : vector<64x32xf32> to vector<8x32xf32>
    %83 = arith.truncf %75 : vector<8x32xf32> to vector<8x32xbf16>
    %cst_26 = arith.constant dense<0.000000e+00> : vector<8x32xf32>
    %84 = tpu.matmul %83, %6, %cst_26 {dimension_numbers = #tpu.dot_dimension_numbers<[1], [0], [0], [1], [0, 0, 1, 1], [], []>} : vector<8x32xbf16>, vector<32x32xbf16>, vector<8x32xf32> -> vector<8x32xf32>
    %85 = arith.addf %82, %84 : vector<8x32xf32>
    %86 = math.tanh %85 : vector<8x32xf32>
    %87 = tpu.concatenate %75, %81 in 1 : vector<8x32xf32>, vector<8x32xf32> -> vector<8x64xf32>
    %88 = arith.truncf %87 : vector<8x64xf32> to vector<8x64xbf16>
    %cst_27 = arith.constant dense<0.000000e+00> : vector<8x32xf32>
    %89 = tpu.matmul %88, %7, %cst_27 {dimension_numbers = #tpu.dot_dimension_numbers<[1], [0], [0], [1], [0, 0, 1, 1], [], []>} : vector<8x64xbf16>, vector<64x32xbf16>, vector<8x32xf32> -> vector<8x32xf32>
    %90 = vector.broadcast %8 : vector<1x32xf32> to vector<8x32xf32>
    %91 = arith.addf %89, %90 : vector<8x32xf32>
    %92 = math.tanh %91 : vector<8x32xf32>
    %93 = tpu.concatenate %86, %92 in 1 : vector<8x32xf32>, vector<8x32xf32> -> vector<8x64xf32>
    %94 = arith.truncf %93 : vector<8x64xf32> to vector<8x64xbf16>
    %cst_28 = arith.constant dense<0.000000e+00> : vector<8x32xf32>
    %95 = tpu.matmul %94, %7, %cst_28 {dimension_numbers = #tpu.dot_dimension_numbers<[1], [0], [0], [1], [0, 0, 1, 1], [], []>} : vector<8x64xbf16>, vector<64x32xbf16>, vector<8x32xf32> -> vector<8x32xf32>
    %96 = vector.broadcast %8 : vector<1x32xf32> to vector<8x32xf32>
    %97 = arith.addf %95, %96 : vector<8x32xf32>
    %98 = math.tanh %97 : vector<8x32xf32>
    %c0_29 = arith.constant 0 : index
    %c0_30 = arith.constant 0 : index
    %99 = vector.load %arg6[%c0_29, %c0_30] : memref<32x4xf32, #tpu.memory_space<vmem>>, vector<32x4xf32>
    %cst_31 = arith.constant dense<0.000000e+00> : vector<8x4xf32>
    %100 = tpu.matmul %98, %99, %cst_31 {dimension_numbers = #tpu.dot_dimension_numbers<[1], [0], [0], [1], [0, 0, 1, 1], [], []>} : vector<8x32xf32>, vector<32x4xf32>, vector<8x4xf32> -> vector<8x4xf32>
    %c0_32 = arith.constant 0 : index
    %c0_33 = arith.constant 0 : index
    %101 = vector.load %arg7[%c0_32, %c0_33] : memref<1x4xf32, #tpu.memory_space<vmem>>, vector<1x4xf32>
    %102 = vector.broadcast %101 : vector<1x4xf32> to vector<8x4xf32>
    %103 = arith.addf %100, %102 : vector<8x4xf32>
    %c0_34 = arith.constant 0 : index
    %c0_35 = arith.constant 0 : index
    %104 = vector.load %arg8[%c0_34, %c0_35] : memref<8x4xf32, #tpu.memory_space<vmem>>, vector<8x4xf32>
    tpu.vector_store %arg8[%c0_34, %c0_35], %103 {strides = array<i32>} : memref<8x4xf32, #tpu.memory_space<vmem>>, vector<8x4xf32>,
    return
  }
}

</mosaic_0001>

<bundles_post_ra>
// kernel: rnn_model_forward.1
= control target key start
LH: loop header
LB: loop body
LE: loop exit
PB: predicated region body
PF: predicated region fallthrough
CT: control target
= control target key end

     0   :  { %vm70_vm0 = vcmask 130048   ;;  %v646_v4 = vmov 0   ;;  %vm137_vm1 = vcmask 261120   ;;  %vm204_vm2 = vcmask 523264   ;;  %s647_s23 = smov 32   ;;  %s865_s1 = inlined_call_operand.vmem [shape: bf16[16,32], index: 1, kind: input, shape index: {}]   ;;  %s866_s2 = inlined_call_operand.vmem [shape: bf16[32,32], index: 2, kind: input, shape index: {}]   ;;  %s867_s0 = inlined_call_operand.vmem [shape: bf16[64,16], index: 0, kind: input, shape index: {}]   ;;  %s868_s3 = inlined_call_operand.vmem [shape: f32[1,32], index: 3, kind: input, shape index: {}]   ;;  %s869_s4 = inlined_call_operand.vmem [shape: bf16[64,32], index: 4, kind: input, shape index: {}]   ;;  %s870_s5 = inlined_call_operand.vmem [shape: f32[1,32], index: 5, kind: input, shape index: {}]   ;;  %s871_s6 = inlined_call_operand.vmem [shape: f32[32,4], index: 6, kind: input, shape index: {}]   ;;  %s872_s7 = inlined_call_operand.vmem [shape: f32[1,4], index: 7, kind: input, shape index: {}]   ;;  %s873_s8 = inlined_call_operand.vmem [shape: f32[8,4], index: 8, kind: output, shape index: {}]  }
   0x1   :  { %v602_v0 = vld [vmem:[%s865_s1] sm:$0xff]  ;;  %v699_v1 = vld [vmem:[%s866_s2 + $0x8] sm:$0xff]  ;;  %v719_v5 = vld [vmem:[%s869_s4 + $0x18] sm:$0xff]  ;;  %vm528_vm3 = vcmask 31744  }
   0x2   :  { %v598_v2 = vld [vmem:[%s867_s0] sm:$0xff]  ;;  %90 = vmatpush.bf16.msra.mxu0 %v602_v0  ;;  %147 = vmatpush.bf16.msra.mxu1 %v699_v1  ;;  %v728_v6 = vld [vmem:[%s869_s4 + $0x10] sm:$0xff]  ;;  %v737_v7 = vld [vmem:[%s869_s4 + $0x8] sm:$0xff] }
   0x3   :  { %v708_v3 = vld [vmem:[%s866_s2] sm:$0xff]  ;;  %166 = vmatpush.bf16.msra.mxu2 %v699_v1  ;;  %212 = vmatpush.bf16.msra.mxu3 %v719_v5  ;;  %v599_v19 = vld [vmem:[%s867_s0 + $0x8] sm:$0xff]  ;;  %v600_v43 = vld [vmem:[%s867_s0 + $0x10] sm:$0xff] }
   0x4   :  { %v746_v8 = vld [vmem:[%s869_s4] sm:$0xff] }
   0x5   :  { %554 = vmatmul.msk.bf16.vlgmr.msra.gmra.mxu0 %vm70_vm0, %v598_v2  ;;  %v757_v9 = vld [vmem:[%s868_s3] ss:$0 sm:$0xff] }
   0x6   :  { %148 = vmatpush.bf16.msra.mxu1 %v708_v3  ;;  %422 = vmatpush.bf16.msrb.mxu0 %v719_v5  ;;  %v776_v21 = vld [vmem:[%s870_s5] ss:$0 sm:$0xff] }
   0x7   :  { %167 = vmatpush.bf16.msra.mxu2 %v708_v3  ;;  %213 = vmatpush.bf16.msra.mxu3 %v728_v6 }
   0x9   :  { %149 = vmatmul.bf16.vlgmr.msra.gmra.mxu1 %v646_v4 }
   0xa   :  { %232 = vmatpush.bf16.msrb.mxu1 %v699_v1  ;;  %423 = vmatpush.bf16.msrb.mxu0 %v728_v6 }
   0xb   :  { %254 = vmatpush.bf16.msrb.mxu2 %v719_v5  ;;  %214 = vmatpush.bf16.msra.mxu3 %v737_v7 }
   0xe   :  { %233 = vmatpush.bf16.msrb.mxu1 %v708_v3  ;;  %424 = vmatpush.bf16.msrb.mxu0 %v737_v7 }
   0xf   :  { %255 = vmatpush.bf16.msrb.mxu2 %v728_v6  ;;  %215 = vmatpush.bf16.msra.mxu3 %v746_v8 }
  0x12   :  { %296 = vmatpush.bf16.msra.mxu1 %v719_v5  ;;  %425 = vmatpush.bf16.msrb.mxu0 %v746_v8 }
  0x13   :  { %256 = vmatpush.bf16.msrb.mxu2 %v737_v7  ;;  %274 = vmatpush.bf16.msrb.mxu3 %v699_v1 }
  0x15   :  { %555 = vmatmul.msk.bf16.gmra.mxu0 %vm70_vm0, %v599_v19 }
  0x16   :  { %297 = vmatpush.bf16.msra.mxu1 %v728_v6 }
  0x17   :  { %257 = vmatpush.bf16.msrb.mxu2 %v746_v8  ;;  %275 = vmatpush.bf16.msrb.mxu3 %v708_v3 }
  0x1a   :  { %298 = vmatpush.bf16.msra.mxu1 %v737_v7 }
  0x1e   :  { %299 = vmatpush.bf16.msra.mxu1 %v746_v8 }
  0x25   :  { %556 = vmatmul.msk.bf16.gmra.mxu0 %vm70_vm0, %v600_v43 }
  0x82   :  { %v92_v10 = vpop.f32.mrf.mxu0 }
  0x83   :  { %v93_v11 = vadd.f32 %v757_v9, %v92_v10 }
  0x86   :  { %v150_v12 = vpop.f32.mrf.mxu1 }
  0x87   :  { %v154_v13 = vadd.f32 %v150_v12, %v93_v11  ;;  %v601_v11 = vld [vmem:[%s867_s0 + $0x18] sm:$0xff] }
  0x88   :  { %557 = vmatmul.msk.bf16.gmra.mxu0 %vm70_vm0, %v601_v11 }
  0x89   :  { %614 = vtanh.f32 %v154_v13 }
  0x8a   :  { %v94_v20 = vpop.f32.mrf.mxu0 }
  0x8b   :  { %v95_v22 = vadd.f32 %v757_v9, %v94_v20 }
  0x8e   :  { %v152_v14 = vpop.f32.mrf.mxu1 }
  0x8f   :  { %v615_v15 = vpop.eup %614 }
  0x90   :  { %v156_v16 = vpack.c.bf16 %v615_v15, %v615_v15  ;;  %v175_v17 = vsel %vm137_vm1, %v615_v15, 0.0 }
  0x91   :  { %v176_v18 = vpack.c.bf16 %v175_v17, %v175_v17 }
  0x92   :  { %566 = vmatmul.msk.bf16.vlgmr.msra.gmra.mxu2 %vm137_vm1, %v156_v16  ;;  %v97_v35 = vpop.f32.mrf.mxu0 }
  0x93   :  { %583 = vmatmul.msk.bf16.vlgmr.msra.gmra.mxu3 %vm204_vm2, %v176_v18  ;;  %316 = vmatpush.bf16.msra.mxu2 %v699_v1  ;;  %v98_v36 = vadd.f32 %v757_v9, %v97_v35 }
  0x94   :  { %338 = vmatpush.bf16.msra.mxu3 %v719_v5 }
  0x97   :  { %317 = vmatpush.bf16.msra.mxu2 %v708_v3 }
  0x98   :  { %339 = vmatpush.bf16.msra.mxu3 %v728_v6 }
  0x9a   :  { %v99_v47 = vpop.f32.mrf.mxu0 }
  0x9b   :  { %v100_v48 = vadd.f32 %v757_v9, %v99_v47 }
  0x9c   :  { %340 = vmatpush.bf16.msra.mxu3 %v737_v7 }
  0xa0   :  { %341 = vmatpush.bf16.msra.mxu3 %v746_v8 }
  0xa2   :  { %v102_v57 = vpop.f32.mrf.mxu0 }
  0xa3   :  { %v103_v58 = vadd.f32 %v757_v9, %v102_v57 }
  0xaa   :  { %v104_v12 = vpop.f32.mrf.mxu0 }
  0xab   :  { %v105_v14 = vadd.f32 %v757_v9, %v104_v12 }
 0x115   :  { %v169_v23 = vpop.f32.mrf.mxu2 }
 0x116   :  { %v173_v24 = vadd.f32 %v169_v23, %v95_v22  ;;  %v217_v25 = vpop.f32.mrf.mxu3 }
 0x117   :  { %v218_v26 = vadd.f32 %v776_v21, %v217_v25 }
 0x118   :  { %616 = vtanh.f32 %v173_v24 }
 0x119   :  { %618 = vtanh.f32 %v218_v26 }
 0x11d   :  { %v171_v27 = vpop.f32.mrf.mxu2 }
 0x11e   :  { %v617_v28 = vpop.eup %616  ;;  %v219_v29 = vpop.f32.mrf.mxu3 }
 0x11f   :  { %v619_v30 = vpop.eup %618  ;;  %v222_v31 = vpack.c.bf16 %v617_v28, %v617_v28 }
 0x120   :  { %242 = vrot.lane.b32.xlu0 %v619_v30, %s647_s23 }
 0x121   :  { %584 = vmatmul.msk.bf16.vlgmr.msrb.gmra.mxu1 %vm137_vm1, %v222_v31 }
 0x122   :  { %358 = vmatpush.bf16.msrb.mxu1 %v699_v1 }
 0x126   :  { %359 = vmatpush.bf16.msrb.mxu1 %v708_v3 }
 0x192   :  { %v243_v32 = vpop.permute.xlu0 %242 }
 0x193   :  { %v245_v33 = vsel %vm137_vm1, %v617_v28, %v243_v32 }
 0x194   :  { %v246_v34 = vpack.c.bf16 %v245_v33, %v245_v33 }
 0x196   :  { %585 = vmatmul.msk.bf16.vlgmr.msrb.gmra.mxu2 %vm204_vm2, %v246_v34 }
 0x197   :  { %380 = vmatpush.bf16.msrb.mxu2 %v719_v5 }
 0x19b   :  { %381 = vmatpush.bf16.msrb.mxu2 %v728_v6 }
 0x19e   :  { %v235_v37 = vpop.f32.mrf.mxu1 }
 0x19f   :  { %v239_v38 = vadd.f32 %v235_v37, %v98_v36  ;;  %382 = vmatpush.bf16.msrb.mxu2 %v737_v7 }
 0x1a1   :  { %620 = vtanh.f32 %v239_v38 }
 0x1a3   :  { %383 = vmatpush.bf16.msrb.mxu2 %v746_v8 }
 0x1a6   :  { %v237_v39 = vpop.f32.mrf.mxu1 }
 0x1a7   :  { %v621_v40 = vpop.eup %620 }
 0x1a8   :  { %v264_v41 = vpack.c.bf16 %v621_v40, %v621_v40 }
 0x1aa   :  { %586 = vmatmul.msk.bf16.vlgmr.msrb.gmra.mxu3 %vm137_vm1, %v264_v41 }
 0x1ab   :  { %400 = vmatpush.bf16.msrb.mxu3 %v699_v1 }
 0x1af   :  { %401 = vmatpush.bf16.msrb.mxu3 %v708_v3 }
 0x219   :  { %v259_v42 = vpop.f32.mrf.mxu2 }
 0x21a   :  { %v260_v44 = vadd.f32 %v776_v21, %v259_v42 }
 0x21c   :  { %622 = vtanh.f32 %v260_v44 }
 0x221   :  { %v261_v45 = vpop.f32.mrf.mxu2 }
 0x222   :  { %v623_v46 = vpop.eup %622 }
 0x223   :  { %284 = vrot.lane.b32.xlu0 %v623_v46, %s647_s23 }
 0x22d   :  { %v277_v49 = vpop.f32.mrf.mxu3 }
 0x22e   :  { %v281_v50 = vadd.f32 %v277_v49, %v100_v48 }
 0x230   :  { %624 = vtanh.f32 %v281_v50 }
 0x235   :  { %v279_v51 = vpop.f32.mrf.mxu3 }
 0x236   :  { %v625_v52 = vpop.eup %624 }
 0x237   :  { %v306_v53 = vpack.c.bf16 %v625_v52, %v625_v52 }
 0x239   :  { %588 = vmatmul.msk.bf16.vlgmr.msra.gmra.mxu2 %vm137_vm1, %v306_v53  ;;  %v499_v53 = vld [vmem:[%s871_s6 + $0x10] sm:$0xff] }
 0x23a   :  { %464 = vmatpush.bf16.msra.mxu2 %v719_v5 }
 0x23e   :  { %465 = vmatpush.bf16.msra.mxu2 %v728_v6 }
 0x242   :  { %466 = vmatpush.bf16.msra.mxu2 %v737_v7 }
 0x246   :  { %467 = vmatpush.bf16.msra.mxu2 %v746_v8 }
 0x295   :  { %v285_v54 = vpop.permute.xlu0 %284 }
 0x296   :  { %v287_v55 = vsel %vm137_vm1, %v621_v40, %v285_v54 }
 0x297   :  { %v288_v56 = vpack.c.bf16 %v287_v55, %v287_v55 }
 0x299   :  { %587 = vmatmul.msk.bf16.vlgmr.msra.gmra.mxu1 %vm204_vm2, %v288_v56 }
 0x29a   :  { %442 = vmatpush.bf16.msra.mxu1 %v699_v1 }
 0x29e   :  { %443 = vmatpush.bf16.msra.mxu1 %v708_v3 }
 0x2bc   :  { %v319_v59 = vpop.f32.mrf.mxu2 }
 0x2bd   :  { %v323_v60 = vadd.f32 %v319_v59, %v103_v58 }
 0x2bf   :  { %626 = vtanh.f32 %v323_v60  ;;  %v498_v60 = vld [vmem:[%s871_s6 + $0x8] sm:$0xff] }
 0x2c4   :  { %v321_v61 = vpop.f32.mrf.mxu2 }
 0x2c5   :  { %v627_v62 = vpop.eup %626  ;;  %v497_v61 = vld [vmem:[%s871_s6] sm:$0xff] }
 0x2c6   :  { %v348_v63 = vpack.c.bf16 %v627_v62, %v627_v62 }
 0x2c8   :  { %590 = vmatmul.msk.bf16.vlgmr.msrb.gmra.mxu1 %vm137_vm1, %v348_v63 }
 0x316   :  { %v301_v0 = vpop.f32.mrf.mxu1 }
 0x317   :  { %v302_v2 = vadd.f32 %v776_v21, %v301_v0 }
 0x319   :  { %628 = vtanh.f32 %v302_v2  ;;  %v613_v2 = vld [vmem:[%s872_s7] ss:$0 sm:$0xff] }
 0x31e   :  { %v303_v4 = vpop.f32.mrf.mxu1 }
 0x31f   :  { %v629_v10 = vpop.eup %628 }
 0x320   :  { %326 = vrot.lane.b32.xlu1 %v629_v10, %s647_s23 }
 0x345   :  { %v361_v1 = vpop.f32.mrf.mxu1 }
 0x346   :  { %v365_v17 = vadd.f32 %v361_v1, %v105_v14 }
 0x348   :  { %630 = vtanh.f32 %v365_v17 }
 0x34d   :  { %v363_v3 = vpop.f32.mrf.mxu1 }
 0x34e   :  { %v631_v18 = vpop.eup %630 }
 0x34f   :  { %v390_v19 = vpack.c.bf16 %v631_v18, %v631_v18 }
 0x392   :  { %v327_v13 = vpop.permute.xlu1 %326 }
 0x393   :  { %v329_v15 = vsel %vm137_vm1, %v625_v52, %v327_v13  ;;  %v500_v52 = vld [vmem:[%s871_s6 + $0x18] sm:$0xff] }
 0x394   :  { %v330_v16 = vpack.c.bf16 %v329_v15, %v329_v15  ;;  %520 = vmatpush.msra.mxu0 %v500_v52 }
 0x396   :  { %589 = vmatmul.msk.bf16.vlgmr.msra.gmra.mxu3 %vm204_vm2, %v330_v16  ;;  %521 = vmatpush.msra.mxu0 %v499_v53 }
 0x397   :  { %487 = vmatpush.bf16.msra.mxu3 %v719_v5  ;;  %v107_v5 = vpop.f32.mrf.mxu0 }
 0x398   :  { %v108_v25 = vadd.f32 %v757_v9, %v107_v5  ;;  %522 = vmatpush.msra.mxu0 %v498_v60 }
 0x39a   :  { %523 = vmatpush.msra.mxu0 %v497_v61 }
 0x39b   :  { %488 = vmatpush.bf16.msra.mxu3 %v728_v6 }
 0x39f   :  { %489 = vmatpush.bf16.msra.mxu3 %v737_v7  ;;  %v109_v40 = vpop.f32.mrf.mxu0 }
 0x3a0   :  { %v110_v54 = vadd.f32 %v757_v9, %v109_v40 }
 0x3a3   :  { %490 = vmatpush.bf16.msra.mxu3 %v746_v8 }
 0x3a6   :  { %592 = vmatmul.msk.bf16.vlgmr.msrb.gmra.mxu3 %vm137_vm1, %v390_v19 }
 0x419   :  { %v343_v20 = vpop.f32.mrf.mxu3 }
 0x41a   :  { %v344_v22 = vadd.f32 %v776_v21, %v343_v20 }
 0x41c   :  { %632 = vtanh.f32 %v344_v22 }
 0x421   :  { %v345_v23 = vpop.f32.mrf.mxu3 }
 0x422   :  { %v633_v24 = vpop.eup %632 }
 0x423   :  { %368 = vrot.lane.b32.xlu1 %v633_v24, %s647_s23 }
 0x429   :  { %v403_v6 = vpop.f32.mrf.mxu3 }
 0x42a   :  { %v407_v26 = vadd.f32 %v403_v6, %v108_v25 }
 0x42c   :  { %634 = vtanh.f32 %v407_v26 }
 0x431   :  { %v405_v7 = vpop.f32.mrf.mxu3 }
 0x432   :  { %v635_v27 = vpop.eup %634 }
 0x433   :  { %v432_v8 = vpack.c.bf16 %v635_v27, %v635_v27 }
 0x435   :  { %594 = vmatmul.msk.bf16.vlgmr.msra.gmra.mxu1 %vm137_vm1, %v432_v8 }
 0x495   :  { %v369_v28 = vpop.permute.xlu1 %368 }
 0x496   :  { %v371_v29 = vsel %vm137_vm1, %v627_v62, %v369_v28 }
 0x497   :  { %v372_v30 = vpack.c.bf16 %v371_v29, %v371_v29 }
 0x499   :  { %591 = vmatmul.msk.bf16.vlgmr.msrb.gmra.mxu2 %vm204_vm2, %v372_v30 }
 0x4b2   :  { %v445_v31 = vpop.f32.mrf.mxu1 }
 0x4b3   :  { %v449_v55 = vadd.f32 %v445_v31, %v110_v54 }
 0x4ba   :  { %v447_v32 = vpop.f32.mrf.mxu1 }
 0x51c   :  { %v385_v33 = vpop.f32.mrf.mxu2 }
 0x51d   :  { %v386_v34 = vadd.f32 %v776_v21, %v385_v33 }
 0x51f   :  { %636 = vtanh.f32 %v386_v34 }
 0x524   :  { %v387_v35 = vpop.f32.mrf.mxu2 }
 0x525   :  { %v637_v36 = vpop.eup %636 }
 0x526   :  { %410 = vrot.lane.b32.xlu2 %v637_v36, %s647_s23 }
 0x580   :  { %v411_v37 = vpop.permute.xlu2 %410 }
 0x581   :  { %v413_v38 = vsel %vm137_vm1, %v631_v18, %v411_v37 }
 0x582   :  { %v414_v39 = vpack.c.bf16 %v413_v38, %v413_v38 }
 0x584   :  { %593 = vmatmul.msk.bf16.vlgmr.msrb.gmra.mxu0 %vm204_vm2, %v414_v39 }
 0x601   :  { %v427_v41 = vpop.f32.mrf.mxu0 }
 0x602   :  { %v428_v42 = vadd.f32 %v776_v21, %v427_v41 }
 0x604   :  { %638 = vtanh.f32 %v428_v42 }
 0x609   :  { %v429_v43 = vpop.f32.mrf.mxu0 }
 0x60a   :  { %v639_v44 = vpop.eup %638 }
 0x60b   :  { %452 = vrot.lane.b32.xlu2 %v639_v44, %s647_s23 }
 0x665   :  { %v453_v45 = vpop.permute.xlu2 %452 }
 0x666   :  { %v455_v46 = vsel %vm137_vm1, %v635_v27, %v453_v45 }
 0x667   :  { %v456_v47 = vpack.c.bf16 %v455_v46, %v455_v46 }
 0x669   :  { %595 = vmatmul.msk.bf16.vlgmr.msra.gmra.mxu2 %vm204_vm2, %v456_v47 }
 0x6ec   :  { %v469_v48 = vpop.f32.mrf.mxu2 }
 0x6ed   :  { %v470_v49 = vadd.f32 %v776_v21, %v469_v48 }
 0x6ef   :  { %640 = vtanh.f32 %v470_v49 }
 0x6f0   :  { %642 = vtanh.f32 %v449_v55 }
 0x6f4   :  { %v471_v50 = vpop.f32.mrf.mxu2 }
 0x6f5   :  { %v641_v51 = vpop.eup %640 }
 0x6f6   :  { %475 = vrot.lane.b32.xlu0 %v641_v51, %s647_s23  ;;  %v643_v56 = vpop.eup %642 }
 0x768   :  { %v476_v57 = vpop.permute.xlu0 %475 }
 0x769   :  { %v478_v58 = vsel %vm137_vm1, %v643_v56, %v476_v57 }
 0x76a   :  { %v479_v59 = vpack.c.bf16 %v478_v58, %v478_v58 }
 0x76c   :  { %596 = vmatmul.msk.bf16.vlgmr.msra.gmra.mxu3 %vm204_vm2, %v479_v59 }
 0x7ef   :  { %v492_v9 = vpop.f32.mrf.mxu3 }
 0x7f0   :  { %v493_v62 = vadd.f32 %v776_v21, %v492_v9 }
 0x7f2   :  { %644 = vtanh.f32 %v493_v62 }
 0x7f7   :  { %v494_v63 = vpop.f32.mrf.mxu3 }
 0x7f8   :  { %v645_v0 = vpop.eup %644 }
 0x7f9   :  { %597 = vmatmul.msk.f32.vlgmr.msra.gmra.mxu0 %vm137_vm1, %v645_v0 }
 0x876   :  { %v525_v4 = vpop.f32.mrf.mxu0 }
 0x877   :  { %v526_v10 = vadd.f32 %v613_v2, %v525_v4 }
 0x879   :  { %529 = vst.msk [vmem:[%s873_s8] sm:$0xff] %vm528_vm3, %v526_v10 }

</bundles_post_ra>
